<compile_context>
chip_gen: v7x
topology: tpu7x:2x2x1
jax: 0.10.0
libtpu: 0.0.40
codegen_flags: <defaults>
</compile_context>

<pallas_src>
import jax
import jax.numpy as jnp
from jax.experimental import pallas as pl
from jax.experimental.pallas import tpu as pltpu


def _cat4_dma_kernel(x0_ref, x1_ref, x2_ref, x3_ref, o_ref, sem):
    # All refs are HBM refs (memory_space=pl.ANY):
    #   x*_ref: (N, C*H*W),  o_ref: (N, 4, C*H*W),  sem: DMA semaphores (4,)
    # Issue four HBM->HBM DMAs (input k -> output slot k) and wait on all of
    # them.  No data is staged through VMEM or vregs.
    srcs = (x0_ref, x1_ref, x2_ref, x3_ref)
    copies = [
        pltpu.make_async_copy(src, o_ref.at[:, k], sem.at[k])
        for k, src in enumerate(srcs)
    ]
    for cp in copies:
        cp.start()
    for cp in copies:
        cp.wait()


def cat_channels(x0, x1, x2, x3):
    """torch.cat([x0, x1, x2, x3], dim=1) for equal-shaped NCHW tensors."""
    n, c, h, w = x0.shape
    assert x1.shape == x0.shape and x2.shape == x0.shape and x3.shape == x0.shape
    assert x1.dtype == x0.dtype and x2.dtype == x0.dtype and x3.dtype == x0.dtype
    chw = c * h * w
    dtype = x0.dtype
    itemsize = jnp.dtype(dtype).itemsize
    total_bytes = 4 * n * chw * itemsize  # bytes read == bytes written

    # Contiguous (free) reshapes: fold C,H,W into one dense per-batch slab so
    # each input and each output slot is a single rectangular DMA.
    xs = [x.reshape(n, chw) for x in (x0, x1, x2, x3)]

    out3 = pl.pallas_call(
        _cat4_dma_kernel,
        out_shape=jax.ShapeDtypeStruct((n, 4, chw), dtype),
        in_specs=[pl.BlockSpec(memory_space=pl.ANY)] * 4,
        out_specs=pl.BlockSpec(memory_space=pl.ANY),
        scratch_shapes=[pltpu.SemaphoreType.DMA((4,))],
        cost_estimate=pl.CostEstimate(
            flops=0, transcendentals=0, bytes_accessed=2 * total_bytes),
    )(*xs)

    # (N, 4, C*H*W) -> (N, 4C, H, W) is a contiguous reshape: slot k becomes
    # channels [k*C, (k+1)*C), i.e. exactly torch.cat([...], dim=1) order.
    return out3.reshape(n, 4 * c, h, w)


if __name__ == "__main__":
    # Shapes from the original module: four NCHW tensors of (1, 192, 12, 12),
    # concatenated on channels -> (1, 768, 12, 12).
    N, C, H, W = 1, 192, 12, 12
    key = jax.random.PRNGKey(0)
    k0, k1, k2, k3 = jax.random.split(key, 4)
    x180 = jax.random.normal(k0, (N, C, H, W), dtype=jnp.float32)
    x189 = jax.random.normal(k1, (N, C, H, W), dtype=jnp.float32)
    x204 = jax.random.normal(k2, (N, C, H, W), dtype=jnp.float32)
    x208 = jax.random.normal(k3, (N, C, H, W), dtype=jnp.float32)

    ref = jnp.concatenate([x180, x189, x204, x208], axis=1)
    out = jax.block_until_ready(cat_channels(x180, x189, x204, x208))
    assert out.shape == (N, 4 * C, H, W), out.shape
    assert out.dtype == ref.dtype
    assert jnp.array_equal(out, ref), "mismatch vs jnp.concatenate (module shape)"

    # Secondary check: batched (strided output) DMA path with a narrow dtype.
    n2, c2, h2, w2 = 2, 8, 4, 4
    kk = jax.random.split(jax.random.PRNGKey(1), 4)
    ys = [jax.random.normal(kk[i], (n2, c2, h2, w2)).astype(jnp.bfloat16)
          for i in range(4)]
    ref2 = jnp.concatenate(ys, axis=1)
    out2 = jax.block_until_ready(cat_channels(*ys))
    assert jnp.array_equal(out2, ref2), "mismatch vs jnp.concatenate (batched bf16)"

    print("KERNEL_OK")
</pallas_src>

<mosaic_0001>
module attributes {stable_mosaic.version = 11 : i64} {
  func.func @_cat4_dma_kernel(%arg0: memref<1x27648xf32, #tpu.memory_space<any>>, %arg1: memref<1x27648xf32, #tpu.memory_space<any>>, %arg2: memref<1x27648xf32, #tpu.memory_space<any>>, %arg3: memref<1x27648xf32, #tpu.memory_space<any>>, %arg4: memref<1x4x27648xf32, #tpu.memory_space<any>>, %arg5: memref<4x!tpu.dma_semaphore, #tpu.memory_space<semaphore_mem>>) attributes {dimension_semantics = [], scalar_prefetch = 0 : i64, scratch_operands = 1 : i64, tpu.core_type = #tpu.core_type<tc>} {
    %c0_i32 = arith.constant 0 : i32
    %c0_i32_0 = arith.constant 0 : i32
    %c0_i32_1 = arith.constant 0 : i32
    %c0_i32_2 = arith.constant 0 : i32
    %0 = tpu.memref_slice %arg4[%c0_i32_1, %c0_i32, %c0_i32_2] : memref<1x4x27648xf32, #tpu.memory_space<any>> -> memref<1x1x27648xf32, #tpu.memory_space<any>>
    %1 = tpu.memref_squeeze %0 : memref<1x1x27648xf32, #tpu.memory_space<any>> -> memref<1x27648xf32, #tpu.memory_space<any>>
    %2 = tpu.memref_slice %arg5[%c0_i32_0] : memref<4x!tpu.dma_semaphore, #tpu.memory_space<semaphore_mem>> -> memref<1x!tpu.dma_semaphore, #tpu.memory_space<semaphore_mem>>
    %3 = tpu.memref_squeeze %2 : memref<1x!tpu.dma_semaphore, #tpu.memory_space<semaphore_mem>> -> memref<!tpu.dma_semaphore, #tpu.memory_space<semaphore_mem>>
    tpu.enqueue_dma source(%arg0 : memref<1x27648xf32, #tpu.memory_space<any>>) target(%1 : memref<1x27648xf32, #tpu.memory_space<any>>) target_semaphore(%3 : memref<!tpu.dma_semaphore, #tpu.memory_space<semaphore_mem>>)
    %c1_i32 = arith.constant 1 : i32
    %c1_i32_3 = arith.constant 1 : i32
    %c0_i32_4 = arith.constant 0 : i32
    %c0_i32_5 = arith.constant 0 : i32
    %4 = tpu.memref_slice %arg4[%c0_i32_4, %c1_i32, %c0_i32_5] : memref<1x4x27648xf32, #tpu.memory_space<any>> -> memref<1x1x27648xf32, #tpu.memory_space<any>>
    %5 = tpu.memref_squeeze %4 : memref<1x1x27648xf32, #tpu.memory_space<any>> -> memref<1x27648xf32, #tpu.memory_space<any>>
    %6 = tpu.memref_slice %arg5[%c1_i32_3] : memref<4x!tpu.dma_semaphore, #tpu.memory_space<semaphore_mem>> -> memref<1x!tpu.dma_semaphore, #tpu.memory_space<semaphore_mem>>
    %7 = tpu.memref_squeeze %6 : memref<1x!tpu.dma_semaphore, #tpu.memory_space<semaphore_mem>> -> memref<!tpu.dma_semaphore, #tpu.memory_space<semaphore_mem>>
    tpu.enqueue_dma source(%arg1 : memref<1x27648xf32, #tpu.memory_space<any>>) target(%5 : memref<1x27648xf32, #tpu.memory_space<any>>) target_semaphore(%7 : memref<!tpu.dma_semaphore, #tpu.memory_space<semaphore_mem>>)
    %c2_i32 = arith.constant 2 : i32
    %c2_i32_6 = arith.constant 2 : i32
    %c0_i32_7 = arith.constant 0 : i32
    %c0_i32_8 = arith.constant 0 : i32
    %8 = tpu.memref_slice %arg4[%c0_i32_7, %c2_i32, %c0_i32_8] : memref<1x4x27648xf32, #tpu.memory_space<any>> -> memref<1x1x27648xf32, #tpu.memory_space<any>>
    %9 = tpu.memref_squeeze %8 : memref<1x1x27648xf32, #tpu.memory_space<any>> -> memref<1x27648xf32, #tpu.memory_space<any>>
    %10 = tpu.memref_slice %arg5[%c2_i32_6] : memref<4x!tpu.dma_semaphore, #tpu.memory_space<semaphore_mem>> -> memref<1x!tpu.dma_semaphore, #tpu.memory_space<semaphore_mem>>
    %11 = tpu.memref_squeeze %10 : memref<1x!tpu.dma_semaphore, #tpu.memory_space<semaphore_mem>> -> memref<!tpu.dma_semaphore, #tpu.memory_space<semaphore_mem>>
    tpu.enqueue_dma source(%arg2 : memref<1x27648xf32, #tpu.memory_space<any>>) target(%9 : memref<1x27648xf32, #tpu.memory_space<any>>) target_semaphore(%11 : memref<!tpu.dma_semaphore, #tpu.memory_space<semaphore_mem>>)
    %c3_i32 = arith.constant 3 : i32
    %c3_i32_9 = arith.constant 3 : i32
    %c0_i32_10 = arith.constant 0 : i32
    %c0_i32_11 = arith.constant 0 : i32
    %12 = tpu.memref_slice %arg4[%c0_i32_10, %c3_i32, %c0_i32_11] : memref<1x4x27648xf32, #tpu.memory_space<any>> -> memref<1x1x27648xf32, #tpu.memory_space<any>>
    %13 = tpu.memref_squeeze %12 : memref<1x1x27648xf32, #tpu.memory_space<any>> -> memref<1x27648xf32, #tpu.memory_space<any>>
    %14 = tpu.memref_slice %arg5[%c3_i32_9] : memref<4x!tpu.dma_semaphore, #tpu.memory_space<semaphore_mem>> -> memref<1x!tpu.dma_semaphore, #tpu.memory_space<semaphore_mem>>
    %15 = tpu.memref_squeeze %14 : memref<1x!tpu.dma_semaphore, #tpu.memory_space<semaphore_mem>> -> memref<!tpu.dma_semaphore, #tpu.memory_space<semaphore_mem>>
    tpu.enqueue_dma source(%arg3 : memref<1x27648xf32, #tpu.memory_space<any>>) target(%13 : memref<1x27648xf32, #tpu.memory_space<any>>) target_semaphore(%15 : memref<!tpu.dma_semaphore, #tpu.memory_space<semaphore_mem>>)
    %c0_i32_12 = arith.constant 0 : i32
    %c0_i32_13 = arith.constant 0 : i32
    %c0_i32_14 = arith.constant 0 : i32
    %c0_i32_15 = arith.constant 0 : i32
    %16 = tpu.memref_slice %arg4[%c0_i32_14, %c0_i32_12, %c0_i32_15] : memref<1x4x27648xf32, #tpu.memory_space<any>> -> memref<1x1x27648xf32, #tpu.memory_space<any>>
    %17 = tpu.memref_squeeze %16 : memref<1x1x27648xf32, #tpu.memory_space<any>> -> memref<1x27648xf32, #tpu.memory_space<any>>
    %18 = tpu.memref_slice %arg5[%c0_i32_13] : memref<4x!tpu.dma_semaphore, #tpu.memory_space<semaphore_mem>> -> memref<1x!tpu.dma_semaphore, #tpu.memory_space<semaphore_mem>>
    %19 = tpu.memref_squeeze %18 : memref<1x!tpu.dma_semaphore, #tpu.memory_space<semaphore_mem>> -> memref<!tpu.dma_semaphore, #tpu.memory_space<semaphore_mem>>
    tpu.wait_dma2 semaphore(%19 : memref<!tpu.dma_semaphore, #tpu.memory_space<semaphore_mem>>) src(%arg0 : memref<1x27648xf32, #tpu.memory_space<any>>) dst(%17 : memref<1x27648xf32, #tpu.memory_space<any>>)
    %c1_i32_16 = arith.constant 1 : i32
    %c1_i32_17 = arith.constant 1 : i32
    %c0_i32_18 = arith.constant 0 : i32
    %c0_i32_19 = arith.constant 0 : i32
    %20 = tpu.memref_slice %arg4[%c0_i32_18, %c1_i32_16, %c0_i32_19] : memref<1x4x27648xf32, #tpu.memory_space<any>> -> memref<1x1x27648xf32, #tpu.memory_space<any>>
    %21 = tpu.memref_squeeze %20 : memref<1x1x27648xf32, #tpu.memory_space<any>> -> memref<1x27648xf32, #tpu.memory_space<any>>
    %22 = tpu.memref_slice %arg5[%c1_i32_17] : memref<4x!tpu.dma_semaphore, #tpu.memory_space<semaphore_mem>> -> memref<1x!tpu.dma_semaphore, #tpu.memory_space<semaphore_mem>>
    %23 = tpu.memref_squeeze %22 : memref<1x!tpu.dma_semaphore, #tpu.memory_space<semaphore_mem>> -> memref<!tpu.dma_semaphore, #tpu.memory_space<semaphore_mem>>
    tpu.wait_dma2 semaphore(%23 : memref<!tpu.dma_semaphore, #tpu.memory_space<semaphore_mem>>) src(%arg1 : memref<1x27648xf32, #tpu.memory_space<any>>) dst(%21 : memref<1x27648xf32, #tpu.memory_space<any>>)
    %c2_i32_20 = arith.constant 2 : i32
    %c2_i32_21 = arith.constant 2 : i32
    %c0_i32_22 = arith.constant 0 : i32
    %c0_i32_23 = arith.constant 0 : i32
    %24 = tpu.memref_slice %arg4[%c0_i32_22, %c2_i32_20, %c0_i32_23] : memref<1x4x27648xf32, #tpu.memory_space<any>> -> memref<1x1x27648xf32, #tpu.memory_space<any>>
    %25 = tpu.memref_squeeze %24 : memref<1x1x27648xf32, #tpu.memory_space<any>> -> memref<1x27648xf32, #tpu.memory_space<any>>
    %26 = tpu.memref_slice %arg5[%c2_i32_21] : memref<4x!tpu.dma_semaphore, #tpu.memory_space<semaphore_mem>> -> memref<1x!tpu.dma_semaphore, #tpu.memory_space<semaphore_mem>>
    %27 = tpu.memref_squeeze %26 : memref<1x!tpu.dma_semaphore, #tpu.memory_space<semaphore_mem>> -> memref<!tpu.dma_semaphore, #tpu.memory_space<semaphore_mem>>
    tpu.wait_dma2 semaphore(%27 : memref<!tpu.dma_semaphore, #tpu.memory_space<semaphore_mem>>) src(%arg2 : memref<1x27648xf32, #tpu.memory_space<any>>) dst(%25 : memref<1x27648xf32, #tpu.memory_space<any>>)
    %c3_i32_24 = arith.constant 3 : i32
    %c3_i32_25 = arith.constant 3 : i32
    %c0_i32_26 = arith.constant 0 : i32
    %c0_i32_27 = arith.constant 0 : i32
    %28 = tpu.memref_slice %arg4[%c0_i32_26, %c3_i32_24, %c0_i32_27] : memref<1x4x27648xf32, #tpu.memory_space<any>> -> memref<1x1x27648xf32, #tpu.memory_space<any>>
    %29 = tpu.memref_squeeze %28 : memref<1x1x27648xf32, #tpu.memory_space<any>> -> memref<1x27648xf32, #tpu.memory_space<any>>
    %30 = tpu.memref_slice %arg5[%c3_i32_25] : memref<4x!tpu.dma_semaphore, #tpu.memory_space<semaphore_mem>> -> memref<1x!tpu.dma_semaphore, #tpu.memory_space<semaphore_mem>>
    %31 = tpu.memref_squeeze %30 : memref<1x!tpu.dma_semaphore, #tpu.memory_space<semaphore_mem>> -> memref<!tpu.dma_semaphore, #tpu.memory_space<semaphore_mem>>
    tpu.wait_dma2 semaphore(%31 : memref<!tpu.dma_semaphore, #tpu.memory_space<semaphore_mem>>) src(%arg3 : memref<1x27648xf32, #tpu.memory_space<any>>) dst(%29 : memref<1x27648xf32, #tpu.memory_space<any>>)
    return
  }
}

</mosaic_0001>

<bundles_post_ra>
// kernel: tpu_custom_call.1
= control target key start
LH: loop header
LB: loop body
LE: loop exit
PB: predicated region body
PF: predicated region fallthrough
CT: control target
= control target key end

     0   :  { %s151_s15 = smov 16   ;;  %s152_s16 = smov 64   ;;  %s212_s0 = inlined_call_operand.hbm [shape: f32[1,27648], index: 0, kind: input, shape index: {}]   ;;  %s213_s1 = inlined_call_operand.hbm [shape: f32[1,27648], index: 1, kind: input, shape index: {}]   ;;  %s214_s2 = inlined_call_operand.hbm [shape: f32[1,27648], index: 2, kind: input, shape index: {}]   ;;  %s215_s3 = inlined_call_operand.hbm [shape: f32[1,27648], index: 3, kind: input, shape index: {}]   ;;  %s216_s4 = inlined_call_operand.hbm [shape: f32[1,4,27648], index: 4, kind: output, shape index: {}]  }
   0x1   :  { %21 = sst [smem:[#allocation4]] %s151_s15  ;;  %s153_s17 = smov 1  }
   0x2   :  { %23 = sst [smem:[#allocation4 + $0x1]] %s152_s16  ;;  %s28_s20 = scalar_lea.hbm %s216_s4, 16 }
   0x3   :  { %25 = sst [smem:[#allocation4 + $0x2]] %s153_s17  ;;  %s154_s21 = smov [#allocation2]  }
   0x4   :  { %s155_s22 = smov [#allocation3]   ;;  %s156_s23 = smov 0  }
   0x5   :  { %27 = dma.general %s212_s0, 3456, %s216_s4, %s154_s21, %s155_s22, [#allocation4], %s156_s23, 0  }
   0x6   :  { %42 = sst [smem:[#allocation6]] %s151_s15  ;;  %s49_s30 = scalar_lea.hbm %s216_s4, 32 }
   0x7   :  { %44 = sst [smem:[#allocation6 + $0x1]] %s152_s16  ;;  %s157_s5 = smov [#allocation2 + $0x1]  }
   0x8   :  { %46 = sst [smem:[#allocation6 + $0x2]] %s153_s17  ;;  %s158_s6 = smov [#allocation5]  }
   0x9   :  { %48 = dma.general %s213_s1, 3456, %s28_s20, %s157_s5, %s158_s6, [#allocation6], %s156_s23, 0  }
   0xa   :  { %63 = sst [smem:[#allocation8]] %s151_s15  ;;  %s70_s0 = scalar_lea.hbm %s216_s4, 48 }
   0xb   :  { %65 = sst [smem:[#allocation8 + $0x1]] %s152_s16  ;;  %s159_s11 = smov [#allocation2 + $0x2]  }
   0xc   :  { %67 = sst [smem:[#allocation8 + $0x2]] %s153_s17  ;;  %s160_s12 = smov [#allocation7]  }
   0xd   :  { %69 = dma.general %s214_s2, 3456, %s49_s30, %s159_s11, %s160_s12, [#allocation8], %s156_s23, 0  }
   0xe   :  { %84 = sst [smem:[#allocation10]] %s151_s15  ;;  %s161_s18 = smov [#allocation2 + $0x3]  }
   0xf   :  { %86 = sst [smem:[#allocation10 + $0x1]] %s152_s16  ;;  %s162_s19 = smov [#allocation9]  }
  0x10   :  { %88 = sst [smem:[#allocation10 + $0x2]] %s153_s17 }
  0x11   :  { %90 = dma.general %s215_s3, 3456, %s70_s0, %s161_s18, %s162_s19, [#allocation10], %s156_s23, 0  }
  0x12   :  { %143 = dma.done.wait [#allocation2], 3456 }
  0x13   :  { %144 = vsyncadd [#allocation2], 4294963840 }
  0x14   :  { %145 = dma.done.wait [#allocation2 + $0x1], 3456 }
  0x15   :  { %146 = vsyncadd [#allocation2 + $0x1], 4294963840 }
  0x16   :  { %147 = dma.done.wait [#allocation2 + $0x2], 3456 }
  0x17   :  { %148 = vsyncadd [#allocation2 + $0x2], 4294963840 }
  0x18   :  { %149 = dma.done.wait [#allocation2 + $0x3], 3456 }
  0x19   :  { %150 = vsyncadd [#allocation2 + $0x3], 4294963840 }
  0x1a   :  { %100 = vsyncmov [#allocation2] }
  0x1d   :  { %s101_s4 = vpop.sfrf %100 }
  0x1e   :  { %p127_p0 = scmp.ne.s32.totalorder %s101_s4, 0 }
  0x20   :  { %105 = shalt.err (%p127_p0)  }
  0x21   :  { %107 = vsyncmov [#allocation2 + $0x1] }
  0x24   :  { %s108_s2 = vpop.sfrf %107 }
  0x25   :  { %p128_p1 = scmp.ne.s32.totalorder %s108_s2, 0 }
  0x27   :  { %112 = shalt.err (%p128_p1)  }
  0x28   :  { %114 = vsyncmov [#allocation2 + $0x2] }
  0x2b   :  { %s115_s15 = vpop.sfrf %114 }
  0x2c   :  { %p129_p2 = scmp.ne.s32.totalorder %s115_s15, 0 }
  0x2e   :  { %119 = shalt.err (%p129_p2)  }
  0x2f   :  { %121 = vsyncmov [#allocation2 + $0x3] }
  0x32   :  { %s122_s3 = vpop.sfrf %121 }
  0x33   :  { %p130_p3 = scmp.ne.s32.totalorder %s122_s3, 0 }
  0x35   :  { %126 = shalt.err (%p130_p3)  }

</bundles_post_ra>
